<compile_context>
chip_gen: v7x
topology: tpu7x:2x2x1
jax: 0.10.0
libtpu: 0.0.40
codegen_flags: <defaults>
</compile_context>

<pallas_src>
import math

import jax
import jax.numpy as jnp
import numpy as np
from jax.experimental import pallas as pl
from jax.experimental.pallas import tpu as pltpu

_LANE = 128
_SUBLANE = 8


def _cdiv(a, b):
    return -(-a // b)


def _round_up(a, b):
    return _cdiv(a, b) * b


def _make_kernel(copies_per_tile, H):
    def kernel(scale_ref, x_ref, ore_ref, oim_ref):
        # grid = (col_blocks, row_blocks); the row axis is innermost so the
        # (2, H, TILE_C) input block index stays constant across row steps and
        # is not re-fetched by the pipeline.
        i = pl.program_id(1)  # row block = group of `copies_per_tile` copies

        re = x_ref[0]                          # (H, TILE_C)
        im = x_ref[1]
        mag = jnp.sqrt(re * re + im * im)      # |x|, computed once per block

        # phase is zero-padded beyond copy 0 -> imag plane is all zeros
        oim_ref[...] = jnp.zeros_like(oim_ref)

        # each decayed copy is a single vmul + lane-dense (H, TILE_C) store
        base = i * copies_per_tile
        for c in range(copies_per_tile):       # static unroll
            ore_ref[c * H:(c + 1) * H, :] = mag * scale_ref[base + c]

        @pl.when(i == 0)
        def _():
            # copy 0: polar(|x|, angle(x)) == x -> pure pass-through
            ore_ref[0:H, :] = re
            oim_ref[0:H, :] = im

    return kernel


def repeat_to_size_planes(x, shape):
    """RepeatToSize forward as split (real, imag) float32 planes of `shape`.

    Consumers that can work on split planes should call this directly and skip
    the complex repack (it re-touches the whole output).
    """
    x2 = jnp.squeeze(x)
    assert x2.ndim == 2, "kernel assumes x.squeeze() is 2D"
    H, W = x2.shape
    Ht, Wt = int(shape[-2]), int(shape[-1])

    # torch F.pad with negative pads crops: fold row/col crops into the input.
    if Wt < W:
        x2 = x2[:, :Wt]
        W = Wt
    if Ht < H:                 # ratio == 1 -> only (cropped) copy 0 exists
        x2 = x2[:Ht, :]
        H = Ht

    ratio = math.ceil(Ht / H)          # number of decayed copies (torch)
    n_copies = _cdiv(Ht, H)            # row blocks of H needed to cover Ht (== ratio)
    assert H % _SUBLANE == 0 or Ht <= H, (
        "rows of squeezed input must be a multiple of 8 (or Ht <= H)")
    # TODO(synk): H % 8 != 0 with Ht > H would need row padding + Element-style
    # row maps; not needed for the shapes this module is used with.

    # Lane-dense stores: kernel always works at a 128-multiple width.
    Wt_k = _round_up(Wt, _LANE)

    # Column tiling (2nd parallel grid axis for wide targets).
    TILE_C = Wt_k if Wt_k <= 512 else 512
    n_col = _cdiv(Wt_k, TILE_C)

    # Row tiling: coalesce many copies into ~512-row output blocks (measured
    # ~85% of HBM roofline at 512 rows vs ~29% at tiny blocks), capped so the
    # 2-plane x 2-buffer output working set stays under ~6 MiB (v7x headroom).
    rows_budget = max(H, (6 << 20) // (16 * TILE_C))
    rows_target = min(512, rows_budget)
    copies_per_tile = max(1, min(n_copies, max(1, rows_target // H)))
    if n_copies >= 2:
        # >= 2 row steps: row block never exceeds Ht and v7x's two TensorCores
        # both get work on the parallel axes.
        copies_per_tile = min(copies_per_tile, _cdiv(n_copies, 2))
    TILE_R = copies_per_tile * H
    n_row = _cdiv(n_copies, copies_per_tile)
    # TODO(synk): for H so large that one copy block overflows VMEM, add
    # intra-copy row tiling (not needed at these sizes).

    # Fused (re, im) input, column-padded ONCE so every store is lane-dense.
    xs = jnp.stack([jnp.real(x2), jnp.imag(x2)]).astype(jnp.float32)  # (2, H, W)
    xs = jnp.pad(xs, ((0, 0), (0, 0), (0, Wt_k - W)))

    # exp(-k) per copy via SMEM scalar prefetch; entries past `ratio` (only
    # reachable in rows masked past Ht) are 0.
    scales = jnp.asarray(
        [math.exp(-k) if k < ratio else 0.0
         for k in range(n_row * copies_per_tile)],
        dtype=jnp.float32,
    )

    kernel = _make_kernel(copies_per_tile, H)

    bytes_out = 2 * Ht * Wt_k * 4
    bytes_in = 2 * H * Wt_k * 4 * n_col
    out_re, out_im = pl.pallas_call(
        kernel,
        out_shape=(
            jax.ShapeDtypeStruct((Ht, Wt_k), jnp.float32),
            jax.ShapeDtypeStruct((Ht, Wt_k), jnp.float32),
        ),
        grid_spec=pltpu.PrefetchScalarGridSpec(
            num_scalar_prefetch=1,             # exp(-k) SMEM table
            grid=(n_col, n_row),               # row axis innermost -> input reuse
            in_specs=[
                pl.BlockSpec((2, H, TILE_C), lambda j, i, s: (0, 0, j)),
            ],
            out_specs=(
                pl.BlockSpec((TILE_R, TILE_C), lambda j, i, s: (i, j)),
                pl.BlockSpec((TILE_R, TILE_C), lambda j, i, s: (i, j)),
            ),
        ),
        compiler_params=pltpu.CompilerParams(
            # Disjoint output tiles, no carried state -> shardable across v7x's
            # two TensorCores; no-op on v5e/v6e.
            dimension_semantics=("parallel", "parallel"),
        ),
        cost_estimate=pl.CostEstimate(
            flops=5 * Ht * Wt_k,
            transcendentals=Ht * Wt_k,         # one sqrt per produced element
            bytes_accessed=bytes_out + bytes_in,
        ),
    )(scales, xs)

    if Wt_k != Wt:
        out_re = out_re[:, :Wt]
        out_im = out_im[:, :Wt]
    return out_re, out_im


def repeat_to_size(x, shape):
    """Matches RepeatToSize(shape).forward(x): complex64 output of `shape`."""
    out_re, out_im = repeat_to_size_planes(x, shape)
    # Kept only to match the torch module's complex64 return type (Pallas refs
    # cannot hold complex64); costs one extra read+write of the output.
    return jax.lax.complex(out_re, out_im)


def _reference(x, shape):
    """Pure-JAX port of the torch forward, for verification."""
    x2 = jnp.squeeze(x)
    phase = jnp.angle(x2)
    mag = jnp.abs(x2)
    ratio = math.ceil(shape[0] / x2.shape[0])
    mag = jnp.concatenate([mag * math.exp(-i) for i in range(ratio)], axis=0)
    mag = mag[: shape[-2], : shape[-1]]
    mag = jnp.pad(
        mag,
        ((0, max(0, shape[-2] - mag.shape[0])),
         (0, max(0, shape[-1] - mag.shape[1]))),
    )
    phase = phase[: shape[-2], : shape[-1]]
    phase = jnp.pad(
        phase,
        ((0, max(0, shape[-2] - phase.shape[0])),
         (0, max(0, shape[-1] - phase.shape[1]))),
    )
    return (mag * jnp.exp(1j * phase)).astype(jnp.complex64)


if __name__ == "__main__":
    key = jax.random.PRNGKey(0)
    kr, ki = jax.random.split(key)

    # Input (1, 8, 16) complex64 -> squeeze -> (8, 16); target (20, 128):
    # ratio = ceil(20/8) = 3 decayed copies, last copy row-cropped (20 < 24),
    # which exercises both the multi-copy row blocks and the masked last block.
    H, W = 8, 16
    target = (20, 128)
    x_re = jax.random.normal(kr, (1, H, W), dtype=jnp.float32)
    x_im = jax.random.normal(ki, (1, H, W), dtype=jnp.float32)
    x = jax.lax.complex(x_re, x_im)

    y = repeat_to_size(x, target)
    y = jax.block_until_ready(y)

    y_ref = _reference(x, target)
    assert y.shape == target and y.dtype == jnp.complex64
    np.testing.assert_allclose(np.asarray(y), np.asarray(y_ref), rtol=1e-5, atol=1e-5)

    print("KERNEL_OK")
</pallas_src>

<mosaic_0001>
module attributes {stable_mosaic.version = 11 : i64} {
  func.func @kernel(%arg0: i32, %arg1: i32, %arg2: memref<4xf32, #tpu.memory_space<smem>>, %arg3: memref<2x8x128xf32, #tpu.memory_space<vmem>>, %arg4: memref<16x128xf32, #tpu.memory_space<vmem>>, %arg5: memref<16x128xf32, #tpu.memory_space<vmem>>) attributes {dimension_semantics = [#tpu.dimension_semantics<parallel>, #tpu.dimension_semantics<parallel>], iteration_bounds = array<i64: 1, 2>, scalar_prefetch = 1 : i64, scratch_operands = 0 : i64, tpu.core_type = #tpu.core_type<tc>, window_params = [{transform_indices = @transform_0, window_bounds = array<i64: 2, 8, 128>}, {transform_indices = @transform_1, window_bounds = array<i64: 16, 128>}, {transform_indices = @transform_2, window_bounds = array<i64: 16, 128>}]} {
    %c0 = arith.constant 0 : index
    %c0_0 = arith.constant 0 : index
    %c0_1 = arith.constant 0 : index
    %0 = vector.load %arg3[%c0, %c0_0, %c0_1] : memref<2x8x128xf32, #tpu.memory_space<vmem>>, vector<1x8x128xf32>
    %1 = vector.shape_cast %0 : vector<1x8x128xf32> to vector<8x128xf32>
    %c1 = arith.constant 1 : index
    %c0_2 = arith.constant 0 : index
    %c0_3 = arith.constant 0 : index
    %2 = vector.load %arg3[%c1, %c0_2, %c0_3] : memref<2x8x128xf32, #tpu.memory_space<vmem>>, vector<1x8x128xf32>
    %3 = vector.shape_cast %2 : vector<1x8x128xf32> to vector<8x128xf32>
    %4 = arith.mulf %1, %1 : vector<8x128xf32>
    %5 = arith.mulf %3, %3 : vector<8x128xf32>
    %6 = arith.addf %4, %5 : vector<8x128xf32>
    %7 = math.sqrt %6 : vector<8x128xf32>
    %cst = arith.constant 0.000000e+00 : f32
    %8 = vector.broadcast %cst : f32 to vector<16x128xf32>
    %c0_4 = arith.constant 0 : index
    %c0_5 = arith.constant 0 : index
    %9 = vector.load %arg5[%c0_4, %c0_5] : memref<16x128xf32, #tpu.memory_space<vmem>>, vector<16x128xf32>
    tpu.vector_store %arg5[%c0_4, %c0_5], %8 {strides = array<i32>} : memref<16x128xf32, #tpu.memory_space<vmem>>, vector<16x128xf32>,
    %c2_i32 = arith.constant 2 : i32
    %10 = arith.muli %arg1, %c2_i32 : i32
    %c0_i32 = arith.constant 0 : i32
    %11 = arith.addi %10, %c0_i32 : i32
    %12 = arith.index_cast %11 : i32 to index
    %13 = memref.load %arg2[%12] : memref<4xf32, #tpu.memory_space<smem>>
    %14 = vector.broadcast %13 : f32 to vector<8x128xf32>
    %15 = arith.mulf %7, %14 : vector<8x128xf32>
    %c0_6 = arith.constant 0 : index
    %c0_7 = arith.constant 0 : index
    %16 = vector.load %arg4[%c0_6, %c0_7] : memref<16x128xf32, #tpu.memory_space<vmem>>, vector<8x128xf32>
    tpu.vector_store %arg4[%c0_6, %c0_7], %15 {strides = array<i32>} : memref<16x128xf32, #tpu.memory_space<vmem>>, vector<8x128xf32>,
    %c1_i32 = arith.constant 1 : i32
    %17 = arith.addi %10, %c1_i32 : i32
    %18 = arith.index_cast %17 : i32 to index
    %19 = memref.load %arg2[%18] : memref<4xf32, #tpu.memory_space<smem>>
    %20 = vector.broadcast %19 : f32 to vector<8x128xf32>
    %21 = arith.mulf %7, %20 : vector<8x128xf32>
    %c8 = arith.constant 8 : index
    %c0_8 = arith.constant 0 : index
    %22 = vector.load %arg4[%c8, %c0_8] : memref<16x128xf32, #tpu.memory_space<vmem>>, vector<8x128xf32>
    tpu.vector_store %arg4[%c8, %c0_8], %21 {strides = array<i32>} : memref<16x128xf32, #tpu.memory_space<vmem>>, vector<8x128xf32>,
    %c0_i32_9 = arith.constant 0 : i32
    %23 = arith.cmpi eq, %arg1, %c0_i32_9 : i32
    %24 = arith.extui %23 : i1 to i32
    %c0_i32_10 = arith.constant 0 : i32
    %25 = arith.cmpi ne, %24, %c0_i32_10 : i32
    scf.if %25 {
      %c0_11 = arith.constant 0 : index
      %c0_12 = arith.constant 0 : index
      %26 = vector.load %arg4[%c0_11, %c0_12] : memref<16x128xf32, #tpu.memory_space<vmem>>, vector<8x128xf32>
      tpu.vector_store %arg4[%c0_11, %c0_12], %1 {strides = array<i32>} : memref<16x128xf32, #tpu.memory_space<vmem>>, vector<8x128xf32>,
      %c0_13 = arith.constant 0 : index
      %c0_14 = arith.constant 0 : index
      %27 = vector.load %arg5[%c0_13, %c0_14] : memref<16x128xf32, #tpu.memory_space<vmem>>, vector<8x128xf32>
      tpu.vector_store %arg5[%c0_13, %c0_14], %3 {strides = array<i32>} : memref<16x128xf32, #tpu.memory_space<vmem>>, vector<8x128xf32>,
    } else {
    }
    return
  }
  func.func @transform_0(%arg0: i32, %arg1: i32, %arg2: memref<4xf32, #tpu.memory_space<smem>>) -> (i32, i32, i32) {
    %c0_i32 = arith.constant 0 : i32
    %c0_i32_0 = arith.constant 0 : i32
    %c0_i32_1 = arith.constant 0 : i32
    return %c0_i32, %c0_i32_0, %arg0 : i32, i32, i32
  }
  func.func @transform_1(%arg0: i32, %arg1: i32, %arg2: memref<4xf32, #tpu.memory_space<smem>>) -> (i32, i32) {
    %c0_i32 = arith.constant 0 : i32
    return %arg1, %arg0 : i32, i32
  }
  func.func @transform_2(%arg0: i32, %arg1: i32, %arg2: memref<4xf32, #tpu.memory_space<smem>>) -> (i32, i32) {
    %c0_i32 = arith.constant 0 : i32
    return %arg1, %arg0 : i32, i32
  }
}

</mosaic_0001>

<bundles_post_ra>
// kernel: tpu_custom_call.1
= control target key start
LH: loop header
LB: loop body
LE: loop exit
PB: predicated region body
PF: predicated region fallthrough
CT: control target
= control target key end

     0   :  { %s899_s0 = inlined_call_operand.hbm [shape: f32[4], index: 0, kind: input, shape index: {}]   ;;  %s900_s1 = inlined_call_operand.hbm [shape: f32[2,8,128], index: 1, kind: input, shape index: {}]   ;;  %s901_s2 = inlined_call_operand.hbm [shape: f32[20,128], index: 2, kind: output, shape index: {0}]   ;;  %s902_s3 = inlined_call_operand.hbm [shape: f32[20,128], index: 3, kind: output, shape index: {1}]  }
   0x1   :  { %s481_s14 = scalar_lea.hbm %s899_s0, 16 }
   0x2   :  { %p482_p0 = scmp.ne.s32.totalorder %s899_s0, %s481_s14  ;;  %p485_p1 = scmp.lt.u32.totalorder %s481_s14, %s899_s0 }
   0x4   :  { %p487_p2 = pnand %p485_p1, %p482_p0 }
   0x6   :  { %490 = shalt.err (!%p487_p2)  }
   0x7   :  { %s637_s19 = smov [#allocation3]  }
   0x8   :  { %10 = dma.hbm_to_smem %s899_s0, 16, %s637_s19, [#allocation2] }
   0x9   :  { %599 = dma.done.wait [#allocation2], 16 }
   0xa   :  { %600 = vsyncadd [#allocation2], 4294967280 }
   0xb   :  { %12 = sfence }
   0xc   :  { %13 = vsyncpa [#allocation5], 0 }
   0xd   :  { %14 = vsyncpa [#allocation6], 0 }
   0xe   :  { %16 = vsyncpa [#allocation6 + $0x1], 0 }
   0xf   :  { %17 = vsyncpa [#allocation9], 0 }
  0x10   :  { %19 = vsyncpa [#allocation9 + $0x1], 0  ;;  %s680_s22 = smov 0   ;;  %s682_s23 = smov 0  }
  0x11   :  { %s684_s24 = smov 0   ;;  %s686_s25 = smov 0  }
  0x12   :  { %s688_s26 = smov 0   ;;  %s690_s27 = smov 0  }
  0x13 LB: > { %s374_s0 = sadd.s32 4294967295, %s635_s27   ;;  %s375_s28 = sadd.s32 4294967294, %s635_s27   ;;  %s635_s27 = sphi %s690_s27, %s25_s27   ;;  %s631_s26 = sphi %s688_s26, %s920_s26   ;;  %s627_s25 = sphi %s686_s25, %s919_s25   ;;  %s623_s24 = sphi %s684_s24, %s918_s24   ;;  %s619_s23 = sphi %s682_s23, %s917_s23   ;;  %s615_s22 = sphi %s680_s22, %s916_s22  }
  0x14   : > { %s34_s29 = sadd.s32 1, %s631_s26  ;;  %s72_s30 = sadd.s32 1, %s623_s24 }
  0x15   : > { %p35_p3 = scmp.ge.s32.totalorder %s34_s29, 2  ;;  %p82_p4 = scmp.ne.s32.totalorder %s623_s24, %s619_s23 }
  0x16   : > { %p83_p5 = scmp.eq.s32.totalorder %s374_s0, 1  ;;  %p88_p6 = scmp.ne.s32.totalorder %s619_s23, %s615_s22 }
  0x17   : > { %s922_s29 = smov (%p35_p3, %s34_s29), 0  ;;  %p89_p8 = scmp.eq.s32.totalorder %s375_s28, 1 }
  0x18   : > { %p720_p7 = por %p83_p5, %p82_p4  ;;  %s67_s5 = ssub.s32 %s631_s26, %s922_s29 }
  0x19   : > { %p376_p9 = scmp.ge.s32.totalorder %s635_s27, 1  ;;  %p70_p10 = scmp.eq.s32.totalorder %s67_s5, 0 }
  0x1a   : > { %s906_s4 = scalar_select %p720_p7, 1, 0 }
  0x1b   : > { %p727_p11 = por %p89_p8, %p88_p6  ;;  %p124_p12 = scmp.lt.s32.totalorder %s635_s27, 3 }
  0x1c   : > { %s733_s7 = scalar_select %p70_p10, %s623_s24, %s72_s30  }
  0x1d   : > { %s907_s6 = scalar_select %p727_p11, 1, 0 }
  0x1e   : > { %p735_p13 = pnand %p376_p9, %p124_p12  ;;  %p739_p0 = scmp.eq.s32.totalorder %s374_s0, 0 }
  0x1f   : > { %s638_s10 = smov [#allocation4]   ;;  %s491_s15 = scalar_lea.hbm %s900_s1, 256 }
  0x20   : > { %s908_s8 = scalar_select %p735_p13, 1, 0 }
  0x21   : > { %s909_s9 = scalar_select %p739_p0, 1, 0 }
  0x22   : > { %p408_p1 = pneg %p735_p13  ;;  %s138_s11 = sshll.u32 %s638_s10, 4  ;;  %s139_s11 = int_to_ptr.vmem [resolvable:$true] %s138_s11 }
  0x23   : > { %p492_p3 = scmp.ne.s32.totalorder %s900_s1, %s491_s15  ;;  %p498_p8 = scmp.lt.u32.totalorder %s491_s15, %s900_s1 }
  0x24   : > { %p747_p2 = pnand %p739_p0, %p408_p1 }
  0x26   : > { %p493_p4 = pneg %p747_p2 }
  0x28   : > { %p494_p5 = pnand %p493_p4, %p492_p3 }
  0x2a   : > { %p495_p6 = pneg %p494_p5 }
  0x2c   : > { %p500_p9 = pnand %p498_p8, %p495_p6 }
  0x2e   : > { %503 = shalt.err (!%p500_p9)
}
  0x2f   : > { %s504_s20 = scalar_lea.vmem %s139_s11, 256  ;;  %p512_p11 = scmp.lt.s32.totalorder %s139_s11, %s139_s11 }
  0x30   : > { %p505_p10 = scmp.ne.s32.totalorder %s139_s11, %s504_s20  ;;  %p513_p7 = scmp.lt.s32.totalorder %s504_s20, %s504_s20 }
  0x32   : > { %p507_p12 = pnand %p505_p10, %p493_p4  ;;  %p514_p0 = por %p513_p7, %p512_p11 }
  0x34   : > { %p508_p1 = pneg %p507_p12 }
  0x36   : > { %p515_p13 = pnand %p514_p0, %p508_p1 }
  0x38   : > { %518 = shalt.err (!%p515_p13)
}
  0x39   : > { %s639_s21 = smov 128   ;;  %s640_s0 = smov 8  }
  0x3a   : > { %411 = dma.hbm_to_vmem [thread:$0]  (!%p747_p2), %s900_s1, 256, %s139_s11, [#allocation5], %s639_s21, %s639_s21, %s640_s0  }
  0x3b   : > { %p911_p3 = scmp.ne.s32.totalorder %s908_s8, 0 }
  0x3c   : > { %p912_p5 = scmp.ne.s32.totalorder (!%p911_p3), %s909_s9, 0 }
  0x3d   : > { %154 = sbr.rel (%p911_p3) target bundleno = 168 (0xa8), region = 24 }
  0x44   : > { %602 = dma.done.wait (%p912_p5), [#allocation5], 256  }
  0x45   : > { %604 = vsyncadd (%p912_p5), [#allocation5], 4294967040  ;;  %s774_s5 = sand.u32 1, %s619_s23   ;;  %v641_v0 = vmov 0.0   ;;  %v186_v1 = vld [vmem:[#allocation4] sm:$0xff]  ;;  %v188_v2 = vld [vmem:[#allocation4 + $0x8] sm:$0xff] }
  0x46   : > { %s380_s10 = sshll.u32 %s774_s5, 4  ;;  %v189_v3 = vmul.f32 %v186_v1, %v186_v1  ;;  %v190_v4 = vmul.f32 %v188_v2, %v188_v2  ;;  %s782_s8 = sshll.u32 %s627_s25, 1 }
  0x47   : > { %s777_s12 = scalar_lea.vmem [#allocation8], %s380_s10  ;;  %s206_s9 = sadd.s32 1, %s782_s8 }
  0x48   : > { %199 = vst [vmem:[%s777_s12] sm:$0xff] %v641_v0  ;;  %200 = vst [vmem:[%s777_s12 + $0x8] sm:$0xff] %v641_v0  ;;  %v191_v5 = vadd.f32 %v190_v4, %v189_v3  ;;  %s202_s11 = sld [smem:[#allocation3 + %s782_s8]]  ;;  %s168_s14 = scalar_lea.vmem [#allocation7], %s380_s10 }
  0x49   : > { %s207_s13 = sld [smem:[#allocation3 + %s206_s9]]  ;;  %p383_p7 = scmp.ne.s32.totalorder %s627_s25, 0 }
  0x4a   : > { %479 = vrsqrt.f32 %v191_v5  ;;  %vm194_vm0 = vcmp.eq.f32.partialorder %v191_v5, inf  ;;  %v197_v7 = vand.u32 2147483648, %v191_v5  ;;  %vm196_vm1 = vcmp.eq.f32.partialorder %v191_v5, 0.0  ;;  %216 = vst [vmem:[%s777_s12] sm:$0xff] (!%p383_p7), %v188_v2 }
  0x4e   : > { %v203_v9 = vstv %s202_s11 }
  0x4f   : > { %v208_v10 = vstv %s207_s13 }
  0x54   : > { %v480_v6 = vpop.eup %479 }
  0x55   : > { %v193_v8 = vmul.f32 %v480_v6, %v191_v5  ;;  %214 = sbr.rel (%p383_p7) target bundleno = 93 (0x5d), region = 32 }
  0x57   : > { %v195_v11 = vsel %vm194_vm0, %v191_v5, %v193_v8 }
  0x58   : > { %v198_v12 = vsel %vm196_vm1, %v197_v7, %v195_v11 }
  0x59   : > { %v204_v13 = vmul.f32 %v203_v9, %v198_v12  ;;  %v209_v14 = vmul.f32 %v208_v10, %v198_v12 }
  0x5b   : > { %205 = vst [vmem:[%s168_s14] sm:$0xff] %v204_v13  ;;  %210 = vst [vmem:[%s168_s14 + $0x8] sm:$0xff] %v209_v14 }
  0x5c   : > { %215 = vst [vmem:[%s168_s14] sm:$0xff] %v186_v1 }
  0x5d PF: > { %s218_s15 = scalar_lea.sflag [#allocation6], %s774_s5  ;;  %s223_s16 = scalar_lea.sflag [#allocation9], %s774_s5 }
  0x5e   : > { %p913_p11 = scmp.ne.s32.totalorder %s906_s4, 0 }
  0x5f   : > { %s231_s17 = ssub.s32 (%p913_p11), 3, %s782_s8 }
  0x60   : > { %229 = sbr.rel (!%p913_p11) target bundleno = 131 (0x83), region = 36  ;;  %p232_p13 = scmp.lt.s32.totalorder (%p913_p11), %s231_s17, 2 }
  0x67   : > { %s924_s17 = smov (!%p232_p13, %s231_s17), 2 }
  0x68   : > { %s793_s18 = sshll.u32 %s924_s17, 7 }
  0x69   : > { %s236_s19 = ssub.s32 256, %s793_s18 }
  0x6a   : > { %237 = vsyncadd %s218_s15, %s236_s19  ;;  %p388_p0 = scmp.ne.s32.totalorder %s793_s18, 0  ;;  %s400_s20 = sshll.u32 %s627_s25, 8 }
  0x6b   : > { %s803_s28 = scalar_lea.hbm %s901_s2, %s400_s20  ;;  %s243_s30 = sshll.u32 %s168_s14, 4  ;;  %s805_s30 = int_to_ptr.vmem [resolvable:$true] %s243_s30 }
  0x6c   : > { %s519_s10 = scalar_lea.vmem %s805_s30, %s793_s18  ;;  %s642_s9 = smov [#allocation7]  }
  0x6d   : > { %p520_p2 = scmp.ne.s32.totalorder %s805_s30, %s519_s10  ;;  %s523_s11 = sshll.u32 %s642_s9, 4  ;;  %s524_s11 = int_to_ptr.vmem [resolvable:$false] %s523_s11 }
  0x6e   : > { %s525_s13 = scalar_lea.vmem %s524_s11, 512  ;;  %p526_p8 = scmp.lt.s32.totalorder %s805_s30, %s524_s11 }
  0x6f   : > { %p521_p4 = pnand %p520_p2, %p388_p0  ;;  %p527_p9 = scmp.lt.s32.totalorder %s525_s13, %s519_s10 }
  0x71   : > { %p522_p6 = pneg %p521_p4  ;;  %p528_p10 = por %p527_p9, %p526_p8 }
  0x73   : > { %p529_p12 = pnand %p528_p10, %p522_p6 }
  0x75   : > { %532 = shalt.err (!%p529_p12)
}
  0x76   : > { %s533_s14 = scalar_lea.hbm %s803_s28, %s793_s18  ;;  %s537_s20 = scalar_lea.hbm %s901_s2, 384 }
  0x77   : > { %p534_p1 = scmp.ne.s32.totalorder %s803_s28, %s533_s14  ;;  %p538_p7 = scmp.lt.u32.totalorder %s803_s28, %s901_s2 }
  0x78   : > { %p539_p11 = scmp.lt.u32.totalorder %s537_s20, %s533_s14  ;;  %p541_p2 = scmp.lt.u32.totalorder %s533_s14, %s803_s28 }
  0x79   : > { %p535_p3 = pnand %p534_p1, %p388_p0 }
  0x7a   : > { %p540_p13 = por %p539_p11, %p538_p7 }
  0x7b   : > { %p536_p5 = pneg %p535_p3 }
  0x7c   : > { %p542_p4 = por %p541_p2, %p540_p13 }
  0x7e   : > { %p543_p6 = pnand %p542_p4, %p536_p5 }
  0x80   : > { %546 = shalt.err (!%p543_p6)
}
  0x81   : > { %s643_s10 = smov 128   ;;  %s644_s9 = smov 8  }
  0x82   : > { %249 = dma.vmem_to_hbm [thread:$0]  (%p388_p0), %s805_s30, %s793_s18, %s803_s28, %s218_s15, %s643_s10, %s643_s10, %s644_s9  }
  0x83 PF: > { %p914_p8 = scmp.ne.s32.totalorder %s906_s4, 0 }
  0x84   : > { %s254_s11 = ssub.s32 (%p914_p8), 3, %s782_s8 }
  0x85   : > { %252 = sbr.rel (!%p914_p8) target bundleno = 168 (0xa8), region = 40  ;;  %p255_p9 = scmp.lt.s32.totalorder (%p914_p8), %s254_s11, 2 }
  0x8c   : > { %s926_s11 = smov (!%p255_p9, %s254_s11), 2 }
  0x8d   : > { %s836_s13 = sshll.u32 %s926_s11, 7 }
  0x8e   : > { %s259_s14 = ssub.s32 256, %s836_s13 }
  0x8f   : > { %260 = vsyncadd %s223_s16, %s259_s14  ;;  %p394_p0 = scmp.ne.s32.totalorder %s836_s13, 0  ;;  %s401_s15 = sshll.u32 %s627_s25, 8 }
  0x90   : > { %s846_s28 = scalar_lea.hbm %s902_s3, %s401_s15  ;;  %s266_s8 = sshll.u32 %s777_s12, 4  ;;  %s849_s8 = int_to_ptr.vmem [resolvable:$true] %s266_s8 }
  0x91   : > { %s547_s30 = scalar_lea.vmem %s849_s8, %s836_s13  ;;  %s645_s17 = smov [#allocation8]  }
  0x92   : > { %p548_p10 = scmp.ne.s32.totalorder %s849_s8, %s547_s30  ;;  %s551_s19 = sshll.u32 %s645_s17, 4  ;;  %s552_s19 = int_to_ptr.vmem [resolvable:$false] %s551_s19 }
  0x93   : > { %s553_s25 = scalar_lea.vmem %s552_s19, 512  ;;  %p554_p3 = scmp.lt.s32.totalorder %s849_s8, %s552_s19 }
  0x94   : > { %p549_p12 = pnand %p548_p10, %p394_p0  ;;  %p555_p5 = scmp.lt.s32.totalorder %s553_s25, %s547_s30 }
  0x96   : > { %p550_p1 = pneg %p549_p12  ;;  %p556_p7 = por %p555_p5, %p554_p3 }
  0x98   : > { %p557_p11 = pnand %p556_p7, %p550_p1 }
  0x9a   : > { %560 = shalt.err (!%p557_p11)
}
  0x9b   : > { %s561_s12 = scalar_lea.hbm %s846_s28, %s836_s13  ;;  %s565_s0 = scalar_lea.hbm %s902_s3, 384 }
  0x9c   : > { %p562_p13 = scmp.ne.s32.totalorder %s846_s28, %s561_s12  ;;  %p566_p6 = scmp.lt.u32.totalorder %s846_s28, %s902_s3 }
  0x9d   : > { %p567_p8 = scmp.lt.u32.totalorder %s565_s0, %s561_s12  ;;  %p569_p10 = scmp.lt.u32.totalorder %s561_s12, %s846_s28 }
  0x9e   : > { %p563_p2 = pnand %p562_p13, %p394_p0 }
  0x9f   : > { %p568_p9 = por %p567_p8, %p566_p6 }
  0xa0   : > { %p564_p4 = pneg %p563_p2 }
  0xa1   : > { %p570_p12 = por %p569_p10, %p568_p9 }
  0xa3   : > { %p571_p1 = pnand %p570_p12, %p564_p4 }
  0xa5   : > { %574 = shalt.err (!%p571_p1)
}
  0xa6   : > { %s646_s11 = smov 128   ;;  %s647_s14 = smov 8  }
  0xa7   : > { %272 = dma.vmem_to_hbm [thread:$0]  (%p394_p0), %s849_s8, %s836_s13, %s846_s28, %s223_s16, %s646_s11, %s646_s11, %s647_s14  }
  0xa8 PF: > { %p421_p3 = scmp.ge.s32.totalorder %s635_s27, 2  ;;  %s281_s15 = sand.u32 1, %s615_s22  }
  0xa9   : > { %p915_p5 = scmp.ne.s32.totalorder %s907_s6, 0  ;;  %s282_s4 = scalar_lea.sflag [#allocation6], %s281_s15 }
  0xab   : > { %p413_p7 = pnand %p421_p3, %p915_p5 }
  0xad   : > { %606 = dma.done.wait (!%p413_p7), %s282_s4, 256  }
  0xae   : > { %608 = vsyncadd (!%p413_p7), %s282_s4, 4294967040  ;;  %s291_s18 = scalar_lea.sflag [#allocation9], %s281_s15 }
  0xaf   : > { %610 = dma.done.wait (!%p413_p7), %s291_s18, 256  }
  0xb0   : > { %612 = vsyncadd (!%p413_p7), %s291_s18, 4294967040  ;;  %s25_s27 = sadd.s32 1, %s635_s27   ;;  %s916_s22 = smov %s619_s23 }
  0xb1   : > { %p22_p11 = scmp.ge.s32.totalorder %s25_s27, 4   ;;  %s917_s23 = smov %s623_s24 }
  0xb2   : > { %s918_s24 = smov %s733_s7  ;;  %s919_s25 = smov %s631_s26 }
  0xb3   : > { %s920_s26 = smov %s922_s29  ;;  %24 = sbr.rel (!%p22_p11) target bundleno = 19 (0x13), region = 84 }
  0xba   :  { %296 = vsyncpa [#allocation5], 1 }
  0xbb   :  { %298 = vsyncpa [#allocation5 + $0x1], 1 }
  0xbc   :  { %299 = vsyncpa [#allocation6], 1 }
  0xbd   :  { %301 = vsyncpa [#allocation6 + $0x1], 1 }
  0xbe   :  { %302 = vsyncpa [#allocation9], 1 }
  0xbf   :  { %304 = vsyncpa [#allocation9 + $0x1], 1 }

</bundles_post_ra>
